<compile_context>
chip_gen: v6e
topology: v6e:2x2x1
jax: 0.10.0
libtpu: 0.0.40
codegen_flags: <defaults>
</compile_context>

<pallas_src>
import jax
import jax.numpy as jnp
from jax.experimental import pallas as pl
from jax.experimental.pallas import tpu as pltpu


def _mlp_kernel(xt_ref, w1_ref, b1_ref, w2_ref, b2_ref, w3_ref, b3_ref, o_ref):
    xt = xt_ref[...]                                            # (3, TB)
    # fc1 + ReLU : (64, 3) @ (3, TB) -> (64, TB)   [MXU, f32 accumulate]
    h1 = jnp.dot(w1_ref[...], xt, preferred_element_type=jnp.float32)
    h1 = jnp.maximum(h1 + b1_ref[...], 0.0)
    # fc2 + ReLU : (32, 64) @ (64, TB) -> (32, TB) [MXU, f32 accumulate]
    h2 = jnp.dot(w2_ref[...], h1, preferred_element_type=jnp.float32)
    h2 = jnp.maximum(h2 + b2_ref[...], 0.0)
    # fc3 as a sublane reduction (avoids a (.,32)@(32,1) MXU matmul):
    #   out^T = sum_k w3[k] * h2^T[k, :] + b3   -> (1, TB), lane-dense
    out = jnp.sum(h2 * w3_ref[...], axis=0, keepdims=True) + b3_ref[...]
    o_ref[...] = out.astype(o_ref.dtype)


def difficulty_regressor(x, params, *, block_b=4096):
    """x: (B, 3) float32.
    params: PyTorch-style layout — w1 (64,3), b1 (64,1), w2 (32,64), b2 (32,1),
            w3 (32,1) (fc3 weight stored as a column), b3 (1,1).
    Returns (B, 1) float32.
    """
    B = x.shape[0]
    # Batch tile: multiple of 128 lanes, capped by block_b.
    tb = min(block_b, ((B + 127) // 128) * 128)
    b_pad = pl.cdiv(B, tb) * tb

    # Pad batch and go feature-major so batch maps to the lane axis.
    x_pad = jnp.pad(x, ((0, b_pad - B), (0, 0)))
    xt = x_pad.T                                                # (3, B_pad)

    const_spec = lambda shape: pl.BlockSpec(shape, lambda i: (0, 0))

    out_t = pl.pallas_call(
        _mlp_kernel,
        out_shape=jax.ShapeDtypeStruct((1, b_pad), jnp.float32),
        grid=(b_pad // tb,),
        in_specs=[
            pl.BlockSpec((3, tb), lambda i: (0, i)),            # x^T tile (streamed)
            const_spec((64, 3)),                                # w1  (resident)
            const_spec((64, 1)),                                # b1
            const_spec((32, 64)),                               # w2
            const_spec((32, 1)),                                # b2
            const_spec((32, 1)),                                # w3 (column)
            const_spec((1, 1)),                                 # b3
        ],
        out_specs=pl.BlockSpec((1, tb), lambda i: (0, i)),      # lane-dense output
        compiler_params=pltpu.CompilerParams(
            dimension_semantics=("parallel",),
            vmem_limit_bytes=64 << 20,
        ),
    )(xt, params["w1"], params["b1"], params["w2"], params["b2"],
      params["w3"], params["b3"])

    # Drop batch padding; (1, B) -> (B, 1) is a pure reshape (no transpose).
    return out_t[0, :B].reshape(B, 1)


def init_params(key):
    """Deterministic parameter init (PyTorch-Linear-style uniform bounds),
    stored in the transposed-kernel layout described above."""
    ks = jax.random.split(key, 6)

    def linear(kw, kb, fan_in, fan_out):
        bound = 1.0 / jnp.sqrt(fan_in)
        w = jax.random.uniform(kw, (fan_out, fan_in), jnp.float32, -bound, bound)
        b = jax.random.uniform(kb, (fan_out, 1), jnp.float32, -bound, bound)
        return w, b

    w1, b1 = linear(ks[0], ks[1], 3, 64)        # (64, 3), (64, 1)
    w2, b2 = linear(ks[2], ks[3], 64, 32)       # (32, 64), (32, 1)
    w3, b3 = linear(ks[4], ks[5], 32, 1)        # (1, 32), (1, 1)
    return {"w1": w1, "b1": b1, "w2": w2, "b2": b2,
            "w3": w3.T, "b3": b3}               # w3 stored as (32, 1) column


def _reference(x, p):
    # Standard row-major PyTorch semantics: x @ W.T + b
    h1 = jnp.maximum(x @ p["w1"].T + p["b1"].T, 0.0)
    h2 = jnp.maximum(h1 @ p["w2"].T + p["b2"].T, 0.0)
    return h2 @ p["w3"] + p["b3"]               # w3 already a (32, 1) column


if __name__ == "__main__":
    key = jax.random.PRNGKey(0)
    k_x, k_p = jax.random.split(key)

    B = 8
    x = jax.random.normal(k_x, (B, 3), dtype=jnp.float32)
    params = init_params(k_p)

    out = difficulty_regressor(x, params)
    out = jax.block_until_ready(out)

    ref = _reference(x, params)
    assert out.shape == (B, 1), out.shape
    assert jnp.allclose(out, ref, atol=1e-5, rtol=1e-5), "mismatch vs reference"

    print("KERNEL_OK")
</pallas_src>

<mosaic_0001>
module attributes {stable_mosaic.version = 11 : i64} {
  func.func @_mlp_kernel(%arg0: i32, %arg1: memref<3x128xf32, #tpu.memory_space<vmem>>, %arg2: memref<64x3xf32, #tpu.memory_space<vmem>>, %arg3: memref<64x1xf32, #tpu.memory_space<vmem>>, %arg4: memref<32x64xf32, #tpu.memory_space<vmem>>, %arg5: memref<32x1xf32, #tpu.memory_space<vmem>>, %arg6: memref<32x1xf32, #tpu.memory_space<vmem>>, %arg7: memref<1x1xf32, #tpu.memory_space<vmem>>, %arg8: memref<1x128xf32, #tpu.memory_space<vmem>>) attributes {dimension_semantics = [#tpu.dimension_semantics<parallel>], iteration_bounds = array<i64: 1>, scalar_prefetch = 0 : i64, scratch_operands = 0 : i64, tpu.core_type = #tpu.core_type<tc>, window_params = [{transform_indices = @transform_0, window_bounds = array<i64: 3, 128>}, {pipeline_mode = #tpu.pipeline_mode<synchronous>, transform_indices = @transform_1, window_bounds = array<i64: 64, 3>}, {pipeline_mode = #tpu.pipeline_mode<synchronous>, transform_indices = @transform_2, window_bounds = array<i64: 64, 1>}, {pipeline_mode = #tpu.pipeline_mode<synchronous>, transform_indices = @transform_3, window_bounds = array<i64: 32, 64>}, {pipeline_mode = #tpu.pipeline_mode<synchronous>, transform_indices = @transform_4, window_bounds = array<i64: 32, 1>}, {pipeline_mode = #tpu.pipeline_mode<synchronous>, transform_indices = @transform_5, window_bounds = array<i64: 32, 1>}, {pipeline_mode = #tpu.pipeline_mode<synchronous>, transform_indices = @transform_6, window_bounds = array<i64: 1, 1>}, {transform_indices = @transform_7, window_bounds = array<i64: 1, 128>}]} {
    %c0 = arith.constant 0 : index
    %c0_0 = arith.constant 0 : index
    %0 = vector.load %arg1[%c0, %c0_0] : memref<3x128xf32, #tpu.memory_space<vmem>>, vector<3x128xf32>
    %c0_1 = arith.constant 0 : index
    %c0_2 = arith.constant 0 : index
    %1 = vector.load %arg2[%c0_1, %c0_2] : memref<64x3xf32, #tpu.memory_space<vmem>>, vector<64x3xf32>
    %cst = arith.constant dense<0.000000e+00> : vector<64x128xf32>
    %2 = tpu.matmul %1, %0, %cst {dimension_numbers = #tpu.dot_dimension_numbers<[1], [0], [0], [1], [0, 0, 1, 1], [], []>} : vector<64x3xf32>, vector<3x128xf32>, vector<64x128xf32> -> vector<64x128xf32>
    %c0_3 = arith.constant 0 : index
    %c0_4 = arith.constant 0 : index
    %3 = vector.load %arg3[%c0_3, %c0_4] : memref<64x1xf32, #tpu.memory_space<vmem>>, vector<64x1xf32>
    %4 = vector.broadcast %3 : vector<64x1xf32> to vector<64x128xf32>
    %5 = arith.addf %2, %4 : vector<64x128xf32>
    %cst_5 = arith.constant 0.000000e+00 : f32
    %6 = vector.broadcast %cst_5 : f32 to vector<64x128xf32>
    %7 = arith.maximumf %5, %6 : vector<64x128xf32>
    %c0_6 = arith.constant 0 : index
    %c0_7 = arith.constant 0 : index
    %8 = vector.load %arg4[%c0_6, %c0_7] : memref<32x64xf32, #tpu.memory_space<vmem>>, vector<32x64xf32>
    %cst_8 = arith.constant dense<0.000000e+00> : vector<32x128xf32>
    %9 = tpu.matmul %8, %7, %cst_8 {dimension_numbers = #tpu.dot_dimension_numbers<[1], [0], [0], [1], [0, 0, 1, 1], [], []>} : vector<32x64xf32>, vector<64x128xf32>, vector<32x128xf32> -> vector<32x128xf32>
    %c0_9 = arith.constant 0 : index
    %c0_10 = arith.constant 0 : index
    %10 = vector.load %arg5[%c0_9, %c0_10] : memref<32x1xf32, #tpu.memory_space<vmem>>, vector<32x1xf32>
    %11 = vector.broadcast %10 : vector<32x1xf32> to vector<32x128xf32>
    %12 = arith.addf %9, %11 : vector<32x128xf32>
    %cst_11 = arith.constant 0.000000e+00 : f32
    %13 = vector.broadcast %cst_11 : f32 to vector<32x128xf32>
    %14 = arith.maximumf %12, %13 : vector<32x128xf32>
    %c0_12 = arith.constant 0 : index
    %c0_13 = arith.constant 0 : index
    %15 = vector.load %arg6[%c0_12, %c0_13] : memref<32x1xf32, #tpu.memory_space<vmem>>, vector<32x1xf32>
    %16 = vector.broadcast %15 : vector<32x1xf32> to vector<32x128xf32>
    %17 = arith.mulf %14, %16 : vector<32x128xf32>
    %cst_14 = arith.constant dense<0.000000e+00> : vector<128xf32>
    %18 = vector.multi_reduction <add>, %17, %cst_14 [0] : vector<32x128xf32> to vector<128xf32>
    %19 = vector.shape_cast %18 : vector<128xf32> to vector<1x128xf32>
    %c0_15 = arith.constant 0 : index
    %c0_16 = arith.constant 0 : index
    %20 = vector.load %arg7[%c0_15, %c0_16] : memref<1x1xf32, #tpu.memory_space<vmem>>, vector<1x1xf32>
    %21 = vector.broadcast %20 : vector<1x1xf32> to vector<1x128xf32>
    %22 = arith.addf %19, %21 : vector<1x128xf32>
    %c0_17 = arith.constant 0 : index
    %c0_18 = arith.constant 0 : index
    %23 = vector.load %arg8[%c0_17, %c0_18] : memref<1x128xf32, #tpu.memory_space<vmem>>, vector<1x128xf32>
    tpu.vector_store %arg8[%c0_17, %c0_18], %22 {strides = array<i32>} : memref<1x128xf32, #tpu.memory_space<vmem>>, vector<1x128xf32>,
    return
  }
  func.func @transform_0(%arg0: i32) -> (i32, i32) {
    %c0_i32 = arith.constant 0 : i32
    %c0_i32_0 = arith.constant 0 : i32
    return %c0_i32, %arg0 : i32, i32
  }
  func.func @transform_1(%arg0: i32) -> (i32, i32) {
    %c0_i32 = arith.constant 0 : i32
    %c0_i32_0 = arith.constant 0 : i32
    %c0_i32_1 = arith.constant 0 : i32
    return %c0_i32, %c0_i32_0 : i32, i32
  }
  func.func @transform_2(%arg0: i32) -> (i32, i32) {
    %c0_i32 = arith.constant 0 : i32
    %c0_i32_0 = arith.constant 0 : i32
    %c0_i32_1 = arith.constant 0 : i32
    return %c0_i32, %c0_i32_0 : i32, i32
  }
  func.func @transform_3(%arg0: i32) -> (i32, i32) {
    %c0_i32 = arith.constant 0 : i32
    %c0_i32_0 = arith.constant 0 : i32
    %c0_i32_1 = arith.constant 0 : i32
    return %c0_i32, %c0_i32_0 : i32, i32
  }
  func.func @transform_4(%arg0: i32) -> (i32, i32) {
    %c0_i32 = arith.constant 0 : i32
    %c0_i32_0 = arith.constant 0 : i32
    %c0_i32_1 = arith.constant 0 : i32
    return %c0_i32, %c0_i32_0 : i32, i32
  }
  func.func @transform_5(%arg0: i32) -> (i32, i32) {
    %c0_i32 = arith.constant 0 : i32
    %c0_i32_0 = arith.constant 0 : i32
    %c0_i32_1 = arith.constant 0 : i32
    return %c0_i32, %c0_i32_0 : i32, i32
  }
  func.func @transform_6(%arg0: i32) -> (i32, i32) {
    %c0_i32 = arith.constant 0 : i32
    %c0_i32_0 = arith.constant 0 : i32
    %c0_i32_1 = arith.constant 0 : i32
    return %c0_i32, %c0_i32_0 : i32, i32
  }
  func.func @transform_7(%arg0: i32) -> (i32, i32) {
    %c0_i32 = arith.constant 0 : i32
    %c0_i32_0 = arith.constant 0 : i32
    return %c0_i32, %arg0 : i32, i32
  }
}

</mosaic_0001>

<bundles_post_ra>
// kernel: tpu_custom_call.1
= control target key start
LH: loop header
LB: loop body
LE: loop exit
PB: predicated region body
PF: predicated region fallthrough
CT: control target
= control target key end

     0   :  { %s680_s0 = inlined_call_operand.vmem [shape: f32[3,128], index: 0, kind: input, shape index: {}]   ;;  %s681_s1 = inlined_call_operand.vmem [shape: f32[64,3], index: 1, kind: input, shape index: {}]   ;;  %s682_s2 = inlined_call_operand.vmem [shape: f32[64,1], index: 2, kind: input, shape index: {}]   ;;  %s683_s3 = inlined_call_operand.vmem [shape: f32[32,64], index: 3, kind: input, shape index: {}]   ;;  %s684_s4 = inlined_call_operand.vmem [shape: f32[32,1], index: 4, kind: input, shape index: {}]   ;;  %s685_s5 = inlined_call_operand.vmem [shape: f32[32,1], index: 5, kind: input, shape index: {}]   ;;  %s686_s6 = inlined_call_operand.<no memory space> [shape: f32[1,1], index: 6, kind: input, shape index: {}]   ;;  %s687_s7 = inlined_call_operand.hbm [shape: f32[1,128], index: 7, kind: output, shape index: {}]  }
   0x1   :  { %v12_v0 = vstv %s686_s6 }
   0x2   :  { %13 = vst [vmem:[#allocation2] sm:$0x1] %v12_v0 }
   0x3   :  { %v29_v1 = vld [vmem:[%s680_s0] sm:$0x7]  ;;  %vm111_vm0 = vcmask 1042432   ;;  %vm86_vm1 = vcmask 23552   ;;  %v31_v3 = vld [vmem:[%s681_s1 + $0x8] sm:$0xff]  ;;  %v32_v4 = vld [vmem:[%s681_s1 + $0x10] sm:$0xff] }
   0x4   :  { %v30_v2 = vld [vmem:[%s681_s1] sm:$0xff]  ;;  %455 = vmatprep.subr.msk.mxu0 %vm111_vm0, %v29_v1  ;;  %v533_v5 = vmov 0   ;;  %v45_v6 = vld [vmem:[%s682_s2 + $0x38] sm:$0xff]  ;;  %v43_v7 = vld [vmem:[%s682_s2 + $0x28] sm:$0xff] }
   0x5   :  { %457 = vmatprep.mubr.msk.f32.mxu0 %vm86_vm1, %v30_v2  ;;  %456 = vmatpush3.msk.msra.mxu0 %vm111_vm0, %v29_v1  ;;  %v33_v8 = vld [vmem:[%s681_s1 + $0x18] sm:$0xff]  ;;  %v34_v9 = vld [vmem:[%s681_s1 + $0x20] sm:$0xff]  ;;  %v44_v10 = vld [vmem:[%s682_s2 + $0x30] sm:$0xff] }
   0x6   :  { %509 = vset.pattern.permute.xlu0 %v533_v5  ;;  %458 = vmatmul.mubr.msk.f32.vlgmr.msra.gmra.mxu0 %vm86_vm1, %v31_v3  ;;  %v42_v11 = vld [vmem:[%s682_s2 + $0x20] sm:$0xff]  ;;  %v35_v12 = vld [vmem:[%s681_s1 + $0x28] sm:$0xff] }
   0x7   :  { %510 = vset.pattern.permute.xlu1 %v533_v5  ;;  %460 = vmatprep.mubr.msk.f32.mxu0 %vm86_vm1, %v32_v4 }
   0x8   :  { %83 = vperm.xlu0 %509, %v45_v6   ;;  %73 = vperm.xlu1 %510, %v43_v7  }
   0xa   :  { %461 = vmatmul.mubr.msk.f32.gmra.mxu0 %vm86_vm1, %v33_v8 }
   0xb   :  { %463 = vmatprep.mubr.msk.f32.mxu0 %vm86_vm1, %v34_v9 }
   0xc   :  { %78 = vperm.xlu0 %509, %v44_v10  }
   0xd   :  { %14 = vsyncpa [#allocation4], 0  ;;  %v36_v13 = vld [vmem:[%s681_s1 + $0x30] sm:$0xff]  ;;  %v41_v14 = vld [vmem:[%s682_s2 + $0x18] sm:$0xff]  ;;  %68 = vperm.xlu1 %510, %v42_v11   ;;  %vm256_vm2 = vcmask 523264  }
   0xe   :  { %v40_v15 = vld [vmem:[%s682_s2 + $0x10] sm:$0xff]  ;;  %464 = vmatmul.mubr.msk.f32.gmra.mxu0 %vm86_vm1, %v35_v12  ;;  %v37_v16 = vld [vmem:[%s681_s1 + $0x38] sm:$0xff]  ;;  %v39_v17 = vld [vmem:[%s682_s2 + $0x8] sm:$0xff] }
   0xf   :  { %466 = vmatprep.mubr.msk.f32.mxu0 %vm86_vm1, %v36_v13  ;;  %v38_v18 = vld [vmem:[%s682_s2] sm:$0xff]  ;;  %v233_v20 = vld [vmem:[%s684_s4 + $0x8] sm:$0xff]  ;;  %v234_v21 = vld [vmem:[%s684_s4 + $0x10] sm:$0xff] }
  0x10   :  { %63 = vperm.xlu0 %509, %v41_v14   ;;  %v232_v19 = vld [vmem:[%s684_s4] sm:$0xff]  ;;  %v235_v22 = vld [vmem:[%s684_s4 + $0x18] sm:$0xff]  ;;  %v359_v24 = vld [vmem:[%s685_s5 + $0x8] sm:$0xff] }
  0x11   :  { %58 = vperm.xlu1 %510, %v40_v15   ;;  %v358_v23 = vld [vmem:[%s685_s5] sm:$0xff]  ;;  %v360_v25 = vld [vmem:[%s685_s5 + $0x10] sm:$0xff]  ;;  %v361_v26 = vld [vmem:[%s685_s5 + $0x18] sm:$0xff] }
  0x12   :  { %467 = vmatmul.mubr.msk.f32.gmra.mxu0 %vm86_vm1, %v37_v16  ;;  %v395_v27 = vld [vmem:[#allocation2] sm:$0x1]  ;;  %v230_v29 = vld [vmem:[%s683_s3 + $0x10] sm:$0xff]  ;;  %v229_v62 = vld [vmem:[%s683_s3 + $0x8] sm:$0xff] }
  0x13   :  { %v228_v28 = vld [vmem:[%s683_s3] sm:$0xff]  ;;  %488 = vmatprep.mubr.msk.f32.mxu1 %vm256_vm2, %v230_v29  ;;  %v231_v63 = vld [vmem:[%s683_s3 + $0x18] sm:$0xff]  ;;  %s534_s3 = smov [#allocation3]  }
  0x14   :  { %53 = vperm.xlu0 %509, %v39_v17   ;;  %485 = vmatprep.mubr.msk.f32.mxu0 %vm256_vm2, %v228_v28  ;;  %s413_s30 = sshll.u32 %s534_s3, 4  ;;  %s414_s30 = int_to_ptr.vmem [resolvable:$true] %s413_s30 }
  0x15   :  { %48 = vperm.xlu1 %510, %v38_v18   ;;  %s511_s8 = scalar_lea.vmem %s414_s30, 16  ;;  %s515_s9 = scalar_lea.vmem %s414_s30, 32 }
  0x16   :  { %p512_p0 = scmp.ne.s32.totalorder %s414_s30, %s511_s8  ;;  %p516_p1 = scmp.lt.s32.totalorder %s414_s30, %s414_s30 }
  0x17   :  { %p517_p2 = scmp.lt.s32.totalorder %s515_s9, %s511_s8 }
  0x18   :  { %238 = vperm.xlu0 %509, %v232_v19  }
  0x19   :  { %243 = vperm.xlu1 %510, %v233_v20   ;;  %p518_p3 = por %p517_p2, %p516_p1 }
  0x1b   :  { %p519_p4 = pnand %p518_p3, %p512_p0 }
  0x1c   :  { %248 = vperm.xlu0 %509, %v234_v21  }
  0x1d   :  { %253 = vperm.xlu1 %510, %v235_v22  }
  0x20   :  { %364 = vperm.xlu0 %509, %v358_v23  }
  0x21   :  { %369 = vperm.xlu1 %510, %v359_v24  }
  0x24   :  { %374 = vperm.xlu0 %509, %v360_v25  }
  0x25   :  { %379 = vperm.xlu1 %510, %v361_v26   ;;  %v401_v26 = vlaneseq }
  0x27   :  { %v402_v29 = vshrl.u32 %v401_v26, 7 }
  0x28   :  { %398 = vperm.xlu0 %509, %v395_v27  }
  0x83   :  { %v84_v32 = vpop.permute.xlu0 %83  ;;  %v74_v34 = vpop.permute.xlu1 %73 }
  0x87   :  { %v79_v37 = vpop.permute.xlu0 %78 }
  0x88   :  { %v69_v39 = vpop.permute.xlu1 %68 }
  0x8b   :  { %v64_v46 = vpop.permute.xlu0 %63 }
  0x8c   :  { %v59_v49 = vpop.permute.xlu1 %58 }
  0x8f   :  { %v54_v54 = vpop.permute.xlu0 %53 }
  0x90   :  { %v49_v57 = vpop.permute.xlu1 %48 }
  0x93   :  { %v239_v0 = vpop.permute.xlu0 %238 }
  0x94   :  { %v244_v1 = vpop.permute.xlu1 %243 }
  0x97   :  { %v249_v2 = vpop.permute.xlu0 %248 }
  0x98   :  { %v254_v3 = vpop.permute.xlu1 %253 }
  0x9b   :  { %v365_v6 = vpop.permute.xlu0 %364 }
  0x9c   :  { %v370_v14 = vpop.permute.xlu1 %369 }
  0x9f   :  { %v375_v20 = vpop.permute.xlu0 %374 }
  0xa0   :  { %v380_v23 = vpop.permute.xlu1 %379 }
  0xc6   :  { %v459_v30 = vpop.f32.mrf.mxu0 }
  0xc7   :  { %v187_v55 = vadd.f32 %v459_v30, %v54_v54 }
  0xc8   :  { %v181_v31 = vpop.f32.mrf.mxu0 }
  0xc9   :  { %v182_v58 = vadd.f32 %v181_v31, %v49_v57  ;;  %v221_v60 = vmax.f32 %v187_v55, 0.0 }
  0xca   :  { %v462_v33 = vpop.f32.mrf.mxu0 }
  0xcb   :  { %v197_v50 = vadd.f32 %v462_v33, %v64_v46  ;;  %v220_v61 = vmax.f32 %v182_v58, 0.0 }
  0xcc   :  { %v191_v35 = vpop.f32.mrf.mxu0 }
  0xcd   :  { %v192_v52 = vadd.f32 %v191_v35, %v59_v49  ;;  %v223_v56 = vmax.f32 %v197_v50, 0.0 }
  0xce   :  { %v465_v36 = vpop.f32.mrf.mxu0 }
  0xcf   :  { %v207_v43 = vadd.f32 %v465_v36, %v74_v34  ;;  %v222_v59 = vmax.f32 %v192_v52, 0.0  ;;  %v399_v34 = vpop.permute.xlu0 %398 }
  0xd0   :  { %v201_v38 = vpop.f32.mrf.mxu0 }
  0xd1   :  { %v202_v47 = vadd.f32 %v201_v38, %v69_v39  ;;  %v225_v51 = vmax.f32 %v207_v43, 0.0 }
  0xd2   :  { %v468_v40 = vpop.f32.mrf.mxu0 }
  0xd3   :  { %v217_v41 = vadd.f32 %v468_v40, %v84_v32  ;;  %v224_v53 = vmax.f32 %v202_v47, 0.0  ;;  %v403_v32 = vsub.s32 0, %v402_v29 }
  0xd4   :  { %v211_v42 = vpop.f32.mrf.mxu0 }
  0xd5   :  { %v227_v44 = vmax.f32 %v217_v41, 0.0  ;;  %v212_v45 = vadd.f32 %v211_v42, %v79_v37  ;;  %v404_v36 = vrot.slane %v399_v34, %v403_v32 }
  0xd7   :  { %v226_v48 = vmax.f32 %v212_v45, 0.0  ;;  %469 = vmatprep.subr.mxu0 %v227_v44  ;;  %491 = vmatprep.subr.mxu1 %v227_v44 }
  0xd8   :  { %470 = vmatpush3.msra.mxu0 %v227_v44  ;;  %499 = vmatpush3.msra.mxu1 %v227_v44 }
  0xd9   :  { %471 = vmatprep.subr.mxu0 %v226_v48  ;;  %492 = vmatprep.subr.mxu1 %v226_v48 }
  0xda   :  { %472 = vmatpush3.msra.mxu0 %v226_v48  ;;  %500 = vmatpush3.msra.mxu1 %v226_v48 }
  0xdb   :  { %473 = vmatprep.subr.mxu0 %v225_v51  ;;  %493 = vmatprep.subr.mxu1 %v225_v51 }
  0xdc   :  { %474 = vmatpush3.msra.mxu0 %v225_v51  ;;  %501 = vmatpush3.msra.mxu1 %v225_v51 }
  0xdd   :  { %475 = vmatprep.subr.mxu0 %v224_v53  ;;  %494 = vmatprep.subr.mxu1 %v224_v53 }
  0xde   :  { %476 = vmatpush3.msra.mxu0 %v224_v53  ;;  %502 = vmatpush3.msra.mxu1 %v224_v53 }
  0xdf   :  { %477 = vmatprep.subr.mxu0 %v223_v56  ;;  %495 = vmatprep.subr.mxu1 %v223_v56 }
  0xe0   :  { %478 = vmatpush3.msra.mxu0 %v223_v56  ;;  %503 = vmatpush3.msra.mxu1 %v223_v56 }
  0xe1   :  { %479 = vmatprep.subr.mxu0 %v222_v59  ;;  %496 = vmatprep.subr.mxu1 %v222_v59 }
  0xe2   :  { %480 = vmatpush3.msra.mxu0 %v222_v59  ;;  %504 = vmatpush3.msra.mxu1 %v222_v59 }
  0xe3   :  { %481 = vmatprep.subr.mxu0 %v221_v60  ;;  %497 = vmatprep.subr.mxu1 %v221_v60 }
  0xe4   :  { %482 = vmatpush3.msra.mxu0 %v221_v60  ;;  %505 = vmatpush3.msra.mxu1 %v221_v60 }
  0xe5   :  { %483 = vmatprep.subr.mxu0 %v220_v61  ;;  %498 = vmatprep.subr.mxu1 %v220_v61 }
  0xe6   :  { %484 = vmatpush3.msra.mxu0 %v220_v61  ;;  %506 = vmatpush3.msra.mxu1 %v220_v61 }
  0xe7   :  { %486 = vmatmul.mubr.msk.f32.vlgmr.msra.gmra.mxu0 %vm256_vm2, %v229_v62  ;;  %489 = vmatmul.mubr.msk.f32.vlgmr.msra.gmra.mxu1 %vm256_vm2, %v231_v63 }
 0x1a7   :  { %v487_v4 = vpop.f32.mrf.mxu0  ;;  %v490_v5 = vpop.f32.mrf.mxu1 }
 0x1a8   :  { %v341_v7 = vadd.f32 %v487_v4, %v244_v1  ;;  %v351_v11 = vadd.f32 %v490_v5, %v254_v3 }
 0x1a9   :  { %v335_v8 = vpop.f32.mrf.mxu0  ;;  %v345_v9 = vpop.f32.mrf.mxu1 }
 0x1aa   :  { %v355_v10 = vmax.f32 %v341_v7, 0.0  ;;  %v336_v12 = vadd.f32 %v335_v8, %v239_v0  ;;  %v346_v13 = vadd.f32 %v345_v9, %v249_v2  ;;  %v357_v18 = vmax.f32 %v351_v11, 0.0 }
 0x1ac   :  { %v354_v15 = vmax.f32 %v336_v12, 0.0  ;;  %v356_v16 = vmax.f32 %v346_v13, 0.0  ;;  %v383_v17 = vmul.f32 %v370_v14, %v355_v10  ;;  %v385_v24 = vmul.f32 %v380_v23, %v357_v18 }
 0x1ae   :  { %v382_v19 = vmul.f32 %v365_v6, %v354_v15  ;;  %v384_v22 = vmul.f32 %v375_v20, %v356_v16 }
 0x1b0   :  { %v386_v21 = vadd.f32 %v383_v17, %v382_v19 }
 0x1b2   :  { %v387_v25 = vadd.f32 %v386_v21, %v384_v22 }
 0x1b4   :  { %v388_v27 = vadd.f32 %v387_v25, %v385_v24 }
 0x1b6   :  { %v389_v28 = vrot.slane %v388_v27, 4 }
 0x1b8   :  { %v390_v30 = vadd.f32 %v389_v28, %v388_v27 }
 0x1ba   :  { %v391_v31 = vrot.slane %v390_v30, 2 }
 0x1bc   :  { %v392_v33 = vadd.f32 %v391_v31, %v390_v30 }
 0x1be   :  { %v393_v35 = vrot.slane %v392_v33, 1 }
 0x1c0   :  { %v394_v37 = vadd.f32 %v393_v35, %v392_v33 }
 0x1c2   :  { %v405_v38 = vadd.f32 %v404_v36, %v394_v37 }
 0x1c4   :  { %406 = vst [vmem:[#allocation3] sm:$0x1] %v405_v38 }
 0x1c5   :  { %522 = shalt.err (!%p519_p4)
}
 0x1c6   :  { %416 = dma.vmem_to_hbm [thread:$0]  %s414_s30, 16, %s687_s7, [#allocation4]  }
 0x1c7   :  { %531 = dma.done.wait [#allocation4], 16  }
 0x1c8   :  { %532 = vsyncadd [#allocation4], 4294967280 }
 0x1c9   :  { %420 = vsyncpa [#allocation4], 1 }

</bundles_post_ra>
